<compile_context>
chip_gen: v5e
topology: v5e:2x2
jax: 0.10.0
libtpu: 0.0.40
codegen_flags: <defaults>
</compile_context>

<pallas_src>
import math
import functools

import jax
import jax.numpy as jnp
from jax.experimental import pallas as pl
from jax.experimental.pallas import tpu as pltpu

_HID = 10  # hidden width of the MLP


# ---------------------------------------------------------------------------
# Pallas kernel: fused  Linear(1->10) -> sigmoid -> Linear(10->1)
# Layout: batch tiled densely over (sublanes, lanes); hidden units unrolled.
# Pure VPU/EUP work driven by SMEM scalar parameters.
# ---------------------------------------------------------------------------
def _mlp_kernel(params_ref, x_ref, o_ref):
    x = x_ref[...]                              # (TR, C) f32, batch on both axes
    acc = jnp.zeros_like(x)
    for j in range(_HID):                       # static unroll of 10 hidden units
        w1j = params_ref[j]                     # SMEM scalar -> vreg splat
        b1j = params_ref[_HID + j]
        w2j = params_ref[2 * _HID + j]
        h = x * w1j + b1j                       # VPU FMA
        s = 0.5 * jnp.tanh(0.5 * h) + 0.5       # sigmoid via single-EUP tanh
        acc = acc + w2j * s                     # VPU FMA accumulate
    o_ref[...] = acc + params_ref[3 * _HID]     # add b2, lane-dense store


# ---------------------------------------------------------------------------
# One-time parameter packing: one tiny SMEM-friendly 1D buffer
#   layout: [w1(10) | b1(10) | w2(10) | b2(1)]  -> (31,) f32
# ---------------------------------------------------------------------------
def prepare_params(w1, b1, w2, b2):
    return jnp.concatenate([
        jnp.asarray(w1, jnp.float32).reshape(-1),
        jnp.asarray(b1, jnp.float32).reshape(-1),
        jnp.asarray(w2, jnp.float32).reshape(-1),
        jnp.asarray(b2, jnp.float32).reshape(-1),
    ])


def _round_up(a, b):
    return -(-a // b) * b


# ---------------------------------------------------------------------------
# Forward wrapper
# ---------------------------------------------------------------------------
@jax.jit
def mlp_forward(x, params):
    """x: (N, 1) f32, params: packed (31,) f32 -> (N, 1) f32."""
    n = x.shape[0]

    # Dense 2D batch tiling: lanes = 128 or 1024, sublane-tile up to 256 rows.
    c = 1024 if n >= 1024 else 128
    rows = pl.cdiv(n, c)
    tr = min(256, _round_up(rows, 8))
    rows_p = _round_up(rows, tr)
    n_p = rows_p * c

    xf = x.reshape(-1)
    if n_p != n:
        # TODO(synk): ragged last block could avoid this pad; kept for simplicity,
        # overhead is < one tile of the batch.
        xf = jnp.pad(xf, (0, n_p - n))
    x2 = xf.reshape(rows_p, c)

    out = pl.pallas_call(
        _mlp_kernel,
        out_shape=jax.ShapeDtypeStruct((rows_p, c), jnp.float32),
        grid=(rows_p // tr,),
        in_specs=[
            pl.BlockSpec(memory_space=pltpu.MemorySpace.SMEM),   # params (31,) scalars
            pl.BlockSpec((tr, c), lambda i: (i, 0)),             # x batch tile
        ],
        out_specs=pl.BlockSpec((tr, c), lambda i: (i, 0)),       # lane-dense output slab
        compiler_params=pltpu.CompilerParams(
            dimension_semantics=("parallel",)),                  # shard tiles over TCs
        cost_estimate=pl.CostEstimate(
            flops=61 * n_p,                 # ~6 flops/elem/hidden-unit * 10 + bias
            transcendentals=_HID * n_p,     # one tanh per element per hidden unit
            bytes_accessed=8 * n_p + 4 * (3 * _HID + 1),
        ),
    )(params, x2)

    return out.reshape(-1)[:n].reshape(n, 1)


# ---------------------------------------------------------------------------
# Deterministic parameter init (PyTorch nn.Linear style: U(-1/sqrt(fan_in), +))
# ---------------------------------------------------------------------------
def init_params(key):
    k1, k2, k3, k4 = jax.random.split(key, 4)
    bound1 = 1.0 / math.sqrt(1.0)     # hidden: fan_in = 1
    bound2 = 1.0 / math.sqrt(_HID)    # output: fan_in = 10
    w1 = jax.random.uniform(k1, (1, _HID), jnp.float32, -bound1, bound1)   # (in, out)
    b1 = jax.random.uniform(k2, (_HID,), jnp.float32, -bound1, bound1)
    w2 = jax.random.uniform(k3, (_HID, 1), jnp.float32, -bound2, bound2)
    b2 = jax.random.uniform(k4, (1,), jnp.float32, -bound2, bound2)
    return w1, b1, w2, b2


if __name__ == "__main__":
    key = jax.random.PRNGKey(0)
    w1, b1, w2, b2 = init_params(key)
    params = prepare_params(w1, b1, w2, b2)   # packed once, reused every call

    # same input as the PyTorch script: [0, 0.1, ..., 1.0] reshaped to (-1, 1)
    x = jnp.linspace(0.0, 1.0, 11, dtype=jnp.float32).reshape(-1, 1)  # (11, 1)

    out = mlp_forward(x, params)
    out = jax.block_until_ready(out)

    # pure element-wise JAX reference
    hid = jax.nn.sigmoid(x * w1.reshape(1, -1) + b1.reshape(1, -1))        # (11, 10)
    ref = (hid * w2.reshape(1, -1)).sum(axis=1, keepdims=True) + b2        # (11, 1)

    assert out.shape == (11, 1)
    assert jnp.allclose(out, ref, atol=1e-5, rtol=1e-5), "mismatch vs reference"

    print("KERNEL_OK")
</pallas_src>

<mosaic_0001>
module attributes {stable_mosaic.version = 11 : i64} {
  func.func @_mlp_kernel(%arg0: i32, %arg1: memref<31xf32, #tpu.memory_space<smem>>, %arg2: memref<8x128xf32, #tpu.memory_space<vmem>>, %arg3: memref<8x128xf32, #tpu.memory_space<vmem>>) attributes {dimension_semantics = [#tpu.dimension_semantics<parallel>], iteration_bounds = array<i64: 1>, scalar_prefetch = 0 : i64, scratch_operands = 0 : i64, tpu.core_type = #tpu.core_type<tc>, window_params = [{transform_indices = @transform_0, window_bounds = array<i64: 31>}, {transform_indices = @transform_1, window_bounds = array<i64: 8, 128>}, {transform_indices = @transform_2, window_bounds = array<i64: 8, 128>}]} {
    %c0 = arith.constant 0 : index
    %c0_0 = arith.constant 0 : index
    %0 = vector.load %arg2[%c0, %c0_0] : memref<8x128xf32, #tpu.memory_space<vmem>>, vector<8x128xf32>
    %cst = arith.constant 0.000000e+00 : f32
    %1 = vector.broadcast %cst : f32 to vector<8x128xf32>
    %c0_1 = arith.constant 0 : index
    %2 = memref.load %arg1[%c0_1] : memref<31xf32, #tpu.memory_space<smem>>
    %c10 = arith.constant 10 : index
    %3 = memref.load %arg1[%c10] : memref<31xf32, #tpu.memory_space<smem>>
    %c20 = arith.constant 20 : index
    %4 = memref.load %arg1[%c20] : memref<31xf32, #tpu.memory_space<smem>>
    %5 = vector.broadcast %2 : f32 to vector<8x128xf32>
    %6 = arith.mulf %0, %5 : vector<8x128xf32>
    %7 = vector.broadcast %3 : f32 to vector<8x128xf32>
    %8 = arith.addf %6, %7 : vector<8x128xf32>
    %cst_2 = arith.constant 5.000000e-01 : f32
    %9 = vector.broadcast %cst_2 : f32 to vector<8x128xf32>
    %10 = arith.mulf %9, %8 : vector<8x128xf32>
    %11 = math.tanh %10 : vector<8x128xf32>
    %cst_3 = arith.constant 5.000000e-01 : f32
    %12 = vector.broadcast %cst_3 : f32 to vector<8x128xf32>
    %13 = arith.mulf %12, %11 : vector<8x128xf32>
    %cst_4 = arith.constant 5.000000e-01 : f32
    %14 = vector.broadcast %cst_4 : f32 to vector<8x128xf32>
    %15 = arith.addf %13, %14 : vector<8x128xf32>
    %16 = vector.broadcast %4 : f32 to vector<8x128xf32>
    %17 = arith.mulf %16, %15 : vector<8x128xf32>
    %18 = arith.addf %1, %17 : vector<8x128xf32>
    %c1 = arith.constant 1 : index
    %19 = memref.load %arg1[%c1] : memref<31xf32, #tpu.memory_space<smem>>
    %c11 = arith.constant 11 : index
    %20 = memref.load %arg1[%c11] : memref<31xf32, #tpu.memory_space<smem>>
    %c21 = arith.constant 21 : index
    %21 = memref.load %arg1[%c21] : memref<31xf32, #tpu.memory_space<smem>>
    %22 = vector.broadcast %19 : f32 to vector<8x128xf32>
    %23 = arith.mulf %0, %22 : vector<8x128xf32>
    %24 = vector.broadcast %20 : f32 to vector<8x128xf32>
    %25 = arith.addf %23, %24 : vector<8x128xf32>
    %cst_5 = arith.constant 5.000000e-01 : f32
    %26 = vector.broadcast %cst_5 : f32 to vector<8x128xf32>
    %27 = arith.mulf %26, %25 : vector<8x128xf32>
    %28 = math.tanh %27 : vector<8x128xf32>
    %cst_6 = arith.constant 5.000000e-01 : f32
    %29 = vector.broadcast %cst_6 : f32 to vector<8x128xf32>
    %30 = arith.mulf %29, %28 : vector<8x128xf32>
    %cst_7 = arith.constant 5.000000e-01 : f32
    %31 = vector.broadcast %cst_7 : f32 to vector<8x128xf32>
    %32 = arith.addf %30, %31 : vector<8x128xf32>
    %33 = vector.broadcast %21 : f32 to vector<8x128xf32>
    %34 = arith.mulf %33, %32 : vector<8x128xf32>
    %35 = arith.addf %18, %34 : vector<8x128xf32>
    %c2 = arith.constant 2 : index
    %36 = memref.load %arg1[%c2] : memref<31xf32, #tpu.memory_space<smem>>
    %c12 = arith.constant 12 : index
    %37 = memref.load %arg1[%c12] : memref<31xf32, #tpu.memory_space<smem>>
    %c22 = arith.constant 22 : index
    %38 = memref.load %arg1[%c22] : memref<31xf32, #tpu.memory_space<smem>>
    %39 = vector.broadcast %36 : f32 to vector<8x128xf32>
    %40 = arith.mulf %0, %39 : vector<8x128xf32>
    %41 = vector.broadcast %37 : f32 to vector<8x128xf32>
    %42 = arith.addf %40, %41 : vector<8x128xf32>
    %cst_8 = arith.constant 5.000000e-01 : f32
    %43 = vector.broadcast %cst_8 : f32 to vector<8x128xf32>
    %44 = arith.mulf %43, %42 : vector<8x128xf32>
    %45 = math.tanh %44 : vector<8x128xf32>
    %cst_9 = arith.constant 5.000000e-01 : f32
    %46 = vector.broadcast %cst_9 : f32 to vector<8x128xf32>
    %47 = arith.mulf %46, %45 : vector<8x128xf32>
    %cst_10 = arith.constant 5.000000e-01 : f32
    %48 = vector.broadcast %cst_10 : f32 to vector<8x128xf32>
    %49 = arith.addf %47, %48 : vector<8x128xf32>
    %50 = vector.broadcast %38 : f32 to vector<8x128xf32>
    %51 = arith.mulf %50, %49 : vector<8x128xf32>
    %52 = arith.addf %35, %51 : vector<8x128xf32>
    %c3 = arith.constant 3 : index
    %53 = memref.load %arg1[%c3] : memref<31xf32, #tpu.memory_space<smem>>
    %c13 = arith.constant 13 : index
    %54 = memref.load %arg1[%c13] : memref<31xf32, #tpu.memory_space<smem>>
    %c23 = arith.constant 23 : index
    %55 = memref.load %arg1[%c23] : memref<31xf32, #tpu.memory_space<smem>>
    %56 = vector.broadcast %53 : f32 to vector<8x128xf32>
    %57 = arith.mulf %0, %56 : vector<8x128xf32>
    %58 = vector.broadcast %54 : f32 to vector<8x128xf32>
    %59 = arith.addf %57, %58 : vector<8x128xf32>
    %cst_11 = arith.constant 5.000000e-01 : f32
    %60 = vector.broadcast %cst_11 : f32 to vector<8x128xf32>
    %61 = arith.mulf %60, %59 : vector<8x128xf32>
    %62 = math.tanh %61 : vector<8x128xf32>
    %cst_12 = arith.constant 5.000000e-01 : f32
    %63 = vector.broadcast %cst_12 : f32 to vector<8x128xf32>
    %64 = arith.mulf %63, %62 : vector<8x128xf32>
    %cst_13 = arith.constant 5.000000e-01 : f32
    %65 = vector.broadcast %cst_13 : f32 to vector<8x128xf32>
    %66 = arith.addf %64, %65 : vector<8x128xf32>
    %67 = vector.broadcast %55 : f32 to vector<8x128xf32>
    %68 = arith.mulf %67, %66 : vector<8x128xf32>
    %69 = arith.addf %52, %68 : vector<8x128xf32>
    %c4 = arith.constant 4 : index
    %70 = memref.load %arg1[%c4] : memref<31xf32, #tpu.memory_space<smem>>
    %c14 = arith.constant 14 : index
    %71 = memref.load %arg1[%c14] : memref<31xf32, #tpu.memory_space<smem>>
    %c24 = arith.constant 24 : index
    %72 = memref.load %arg1[%c24] : memref<31xf32, #tpu.memory_space<smem>>
    %73 = vector.broadcast %70 : f32 to vector<8x128xf32>
    %74 = arith.mulf %0, %73 : vector<8x128xf32>
    %75 = vector.broadcast %71 : f32 to vector<8x128xf32>
    %76 = arith.addf %74, %75 : vector<8x128xf32>
    %cst_14 = arith.constant 5.000000e-01 : f32
    %77 = vector.broadcast %cst_14 : f32 to vector<8x128xf32>
    %78 = arith.mulf %77, %76 : vector<8x128xf32>
    %79 = math.tanh %78 : vector<8x128xf32>
    %cst_15 = arith.constant 5.000000e-01 : f32
    %80 = vector.broadcast %cst_15 : f32 to vector<8x128xf32>
    %81 = arith.mulf %80, %79 : vector<8x128xf32>
    %cst_16 = arith.constant 5.000000e-01 : f32
    %82 = vector.broadcast %cst_16 : f32 to vector<8x128xf32>
    %83 = arith.addf %81, %82 : vector<8x128xf32>
    %84 = vector.broadcast %72 : f32 to vector<8x128xf32>
    %85 = arith.mulf %84, %83 : vector<8x128xf32>
    %86 = arith.addf %69, %85 : vector<8x128xf32>
    %c5 = arith.constant 5 : index
    %87 = memref.load %arg1[%c5] : memref<31xf32, #tpu.memory_space<smem>>
    %c15 = arith.constant 15 : index
    %88 = memref.load %arg1[%c15] : memref<31xf32, #tpu.memory_space<smem>>
    %c25 = arith.constant 25 : index
    %89 = memref.load %arg1[%c25] : memref<31xf32, #tpu.memory_space<smem>>
    %90 = vector.broadcast %87 : f32 to vector<8x128xf32>
    %91 = arith.mulf %0, %90 : vector<8x128xf32>
    %92 = vector.broadcast %88 : f32 to vector<8x128xf32>
    %93 = arith.addf %91, %92 : vector<8x128xf32>
    %cst_17 = arith.constant 5.000000e-01 : f32
    %94 = vector.broadcast %cst_17 : f32 to vector<8x128xf32>
    %95 = arith.mulf %94, %93 : vector<8x128xf32>
    %96 = math.tanh %95 : vector<8x128xf32>
    %cst_18 = arith.constant 5.000000e-01 : f32
    %97 = vector.broadcast %cst_18 : f32 to vector<8x128xf32>
    %98 = arith.mulf %97, %96 : vector<8x128xf32>
    %cst_19 = arith.constant 5.000000e-01 : f32
    %99 = vector.broadcast %cst_19 : f32 to vector<8x128xf32>
    %100 = arith.addf %98, %99 : vector<8x128xf32>
    %101 = vector.broadcast %89 : f32 to vector<8x128xf32>
    %102 = arith.mulf %101, %100 : vector<8x128xf32>
    %103 = arith.addf %86, %102 : vector<8x128xf32>
    %c6 = arith.constant 6 : index
    %104 = memref.load %arg1[%c6] : memref<31xf32, #tpu.memory_space<smem>>
    %c16 = arith.constant 16 : index
    %105 = memref.load %arg1[%c16] : memref<31xf32, #tpu.memory_space<smem>>
    %c26 = arith.constant 26 : index
    %106 = memref.load %arg1[%c26] : memref<31xf32, #tpu.memory_space<smem>>
    %107 = vector.broadcast %104 : f32 to vector<8x128xf32>
    %108 = arith.mulf %0, %107 : vector<8x128xf32>
    %109 = vector.broadcast %105 : f32 to vector<8x128xf32>
    %110 = arith.addf %108, %109 : vector<8x128xf32>
    %cst_20 = arith.constant 5.000000e-01 : f32
    %111 = vector.broadcast %cst_20 : f32 to vector<8x128xf32>
    %112 = arith.mulf %111, %110 : vector<8x128xf32>
    %113 = math.tanh %112 : vector<8x128xf32>
    %cst_21 = arith.constant 5.000000e-01 : f32
    %114 = vector.broadcast %cst_21 : f32 to vector<8x128xf32>
    %115 = arith.mulf %114, %113 : vector<8x128xf32>
    %cst_22 = arith.constant 5.000000e-01 : f32
    %116 = vector.broadcast %cst_22 : f32 to vector<8x128xf32>
    %117 = arith.addf %115, %116 : vector<8x128xf32>
    %118 = vector.broadcast %106 : f32 to vector<8x128xf32>
    %119 = arith.mulf %118, %117 : vector<8x128xf32>
    %120 = arith.addf %103, %119 : vector<8x128xf32>
    %c7 = arith.constant 7 : index
    %121 = memref.load %arg1[%c7] : memref<31xf32, #tpu.memory_space<smem>>
    %c17 = arith.constant 17 : index
    %122 = memref.load %arg1[%c17] : memref<31xf32, #tpu.memory_space<smem>>
    %c27 = arith.constant 27 : index
    %123 = memref.load %arg1[%c27] : memref<31xf32, #tpu.memory_space<smem>>
    %124 = vector.broadcast %121 : f32 to vector<8x128xf32>
    %125 = arith.mulf %0, %124 : vector<8x128xf32>
    %126 = vector.broadcast %122 : f32 to vector<8x128xf32>
    %127 = arith.addf %125, %126 : vector<8x128xf32>
    %cst_23 = arith.constant 5.000000e-01 : f32
    %128 = vector.broadcast %cst_23 : f32 to vector<8x128xf32>
    %129 = arith.mulf %128, %127 : vector<8x128xf32>
    %130 = math.tanh %129 : vector<8x128xf32>
    %cst_24 = arith.constant 5.000000e-01 : f32
    %131 = vector.broadcast %cst_24 : f32 to vector<8x128xf32>
    %132 = arith.mulf %131, %130 : vector<8x128xf32>
    %cst_25 = arith.constant 5.000000e-01 : f32
    %133 = vector.broadcast %cst_25 : f32 to vector<8x128xf32>
    %134 = arith.addf %132, %133 : vector<8x128xf32>
    %135 = vector.broadcast %123 : f32 to vector<8x128xf32>
    %136 = arith.mulf %135, %134 : vector<8x128xf32>
    %137 = arith.addf %120, %136 : vector<8x128xf32>
    %c8 = arith.constant 8 : index
    %138 = memref.load %arg1[%c8] : memref<31xf32, #tpu.memory_space<smem>>
    %c18 = arith.constant 18 : index
    %139 = memref.load %arg1[%c18] : memref<31xf32, #tpu.memory_space<smem>>
    %c28 = arith.constant 28 : index
    %140 = memref.load %arg1[%c28] : memref<31xf32, #tpu.memory_space<smem>>
    %141 = vector.broadcast %138 : f32 to vector<8x128xf32>
    %142 = arith.mulf %0, %141 : vector<8x128xf32>
    %143 = vector.broadcast %139 : f32 to vector<8x128xf32>
    %144 = arith.addf %142, %143 : vector<8x128xf32>
    %cst_26 = arith.constant 5.000000e-01 : f32
    %145 = vector.broadcast %cst_26 : f32 to vector<8x128xf32>
    %146 = arith.mulf %145, %144 : vector<8x128xf32>
    %147 = math.tanh %146 : vector<8x128xf32>
    %cst_27 = arith.constant 5.000000e-01 : f32
    %148 = vector.broadcast %cst_27 : f32 to vector<8x128xf32>
    %149 = arith.mulf %148, %147 : vector<8x128xf32>
    %cst_28 = arith.constant 5.000000e-01 : f32
    %150 = vector.broadcast %cst_28 : f32 to vector<8x128xf32>
    %151 = arith.addf %149, %150 : vector<8x128xf32>
    %152 = vector.broadcast %140 : f32 to vector<8x128xf32>
    %153 = arith.mulf %152, %151 : vector<8x128xf32>
    %154 = arith.addf %137, %153 : vector<8x128xf32>
    %c9 = arith.constant 9 : index
    %155 = memref.load %arg1[%c9] : memref<31xf32, #tpu.memory_space<smem>>
    %c19 = arith.constant 19 : index
    %156 = memref.load %arg1[%c19] : memref<31xf32, #tpu.memory_space<smem>>
    %c29 = arith.constant 29 : index
    %157 = memref.load %arg1[%c29] : memref<31xf32, #tpu.memory_space<smem>>
    %158 = vector.broadcast %155 : f32 to vector<8x128xf32>
    %159 = arith.mulf %0, %158 : vector<8x128xf32>
    %160 = vector.broadcast %156 : f32 to vector<8x128xf32>
    %161 = arith.addf %159, %160 : vector<8x128xf32>
    %cst_29 = arith.constant 5.000000e-01 : f32
    %162 = vector.broadcast %cst_29 : f32 to vector<8x128xf32>
    %163 = arith.mulf %162, %161 : vector<8x128xf32>
    %164 = math.tanh %163 : vector<8x128xf32>
    %cst_30 = arith.constant 5.000000e-01 : f32
    %165 = vector.broadcast %cst_30 : f32 to vector<8x128xf32>
    %166 = arith.mulf %165, %164 : vector<8x128xf32>
    %cst_31 = arith.constant 5.000000e-01 : f32
    %167 = vector.broadcast %cst_31 : f32 to vector<8x128xf32>
    %168 = arith.addf %166, %167 : vector<8x128xf32>
    %169 = vector.broadcast %157 : f32 to vector<8x128xf32>
    %170 = arith.mulf %169, %168 : vector<8x128xf32>
    %171 = arith.addf %154, %170 : vector<8x128xf32>
    %c30 = arith.constant 30 : index
    %172 = memref.load %arg1[%c30] : memref<31xf32, #tpu.memory_space<smem>>
    %173 = vector.broadcast %172 : f32 to vector<8x128xf32>
    %174 = arith.addf %171, %173 : vector<8x128xf32>
    %c0_32 = arith.constant 0 : index
    %c0_33 = arith.constant 0 : index
    %175 = vector.load %arg3[%c0_32, %c0_33] : memref<8x128xf32, #tpu.memory_space<vmem>>, vector<8x128xf32>
    tpu.vector_store %arg3[%c0_32, %c0_33], %174 {strides = array<i32>} : memref<8x128xf32, #tpu.memory_space<vmem>>, vector<8x128xf32>,
    return
  }
  func.func @transform_0(%arg0: i32) -> i32 {
    %c0_i32 = arith.constant 0 : i32
    %c0_i32_0 = arith.constant 0 : i32
    return %c0_i32 : i32
  }
  func.func @transform_1(%arg0: i32) -> (i32, i32) {
    %c0_i32 = arith.constant 0 : i32
    %c0_i32_0 = arith.constant 0 : i32
    return %arg0, %c0_i32 : i32, i32
  }
  func.func @transform_2(%arg0: i32) -> (i32, i32) {
    %c0_i32 = arith.constant 0 : i32
    %c0_i32_0 = arith.constant 0 : i32
    return %arg0, %c0_i32 : i32, i32
  }
}

</mosaic_0001>

<bundles_post_ra>
// kernel: mlp_forward.1
= control target key start
LH: loop header
LB: loop body
LE: loop exit
PB: predicated region body
PF: predicated region fallthrough
CT: control target
= control target key end

     0   :  { %7 = vsyncpa [#allocation3], 0  ;;  %s239_s12 = smov [#allocation2]   ;;  %s321_s0 = inlined_call_operand.vmem [shape: f32[31], index: 0, kind: input, shape index: {}]   ;;  %s322_s1 = inlined_call_operand.vmem [shape: f32[8,128], index: 1, kind: input, shape index: {}]   ;;  %s323_s2 = inlined_call_operand.vmem [shape: f32[8,128], index: 2, kind: output, shape index: {}]  }
   0x1   :  { %s13_s11 = sshll.u32 %s321_s0, 4  ;;  %s14_s11 = int_to_ptr.vmem [resolvable:$true] %s13_s11 }
   0x2   :  { %16 = dma.vmem_to_smem %s14_s11, 16, %s239_s12, [#allocation3]  }
   0x3   :  { %237 = dma.done.wait [#allocation3], 16  }
   0x4   :  { %238 = vsyncadd [#allocation3], 4294967280 }
   0x5   :  { %23 = sfence }
   0x6   :  { %s25_s13 = sld [smem:[#allocation2]]  ;;  %v261_v0 = vld [vmem:[%s322_s1] sm:$0xff] }
   0x7   :  { %s174_s14 = sld [smem:[#allocation2 + $0xa]] }
   0x8   :  { %s176_s15 = sld [smem:[#allocation2 + $0x1]] }
   0x9   :  { %s177_s18 = sld [smem:[#allocation2 + $0xb]] }
   0xa   :  { %s179_s19 = sld [smem:[#allocation2 + $0x2]] }
   0xb   :  { %s180_s0 = sld [smem:[#allocation2 + $0xc]] }
   0xc   :  { %v28_v1 = vstv %s25_s13  ;;  %s182_s20 = sld [smem:[#allocation2 + $0x3]] }
   0xd   :  { %v29_v2 = vmul.f32 %v28_v1, %v261_v0  ;;  %v30_v3 = vstv %s174_s14  ;;  %s183_s21 = sld [smem:[#allocation2 + $0xd]] }
   0xe   :  { %v42_v5 = vstv %s176_s15  ;;  %s265_s22 = sld [smem:[#allocation2 + $0x14]] }
   0xf   :  { %v31_v4 = vadd.f32 %v30_v3, %v29_v2  ;;  %v43_v6 = vmul.f32 %v42_v5, %v261_v0  ;;  %v44_v7 = vstv %s177_s18  ;;  %s185_s1 = sld [smem:[#allocation2 + $0x4]] }
  0x10   :  { %v56_v10 = vstv %s179_s19  ;;  %s186_s23 = sld [smem:[#allocation2 + $0xe]] }
  0x11   :  { %v32_v8 = vmul.f32 0.5, %v31_v4  ;;  %v45_v9 = vadd.f32 %v44_v7, %v43_v6  ;;  %v57_v11 = vmul.f32 %v56_v10, %v261_v0  ;;  %v58_v12 = vstv %s180_s0  ;;  %s268_s24 = sld [smem:[#allocation2 + $0x15]] }
  0x12   :  { %v70_v15 = vstv %s182_s20  ;;  %s188_s25 = sld [smem:[#allocation2 + $0x5]] }
  0x13   :  { %205 = vtanh.f32 %v32_v8  ;;  %v46_v13 = vmul.f32 0.5, %v45_v9  ;;  %v59_v14 = vadd.f32 %v58_v12, %v57_v11  ;;  %v71_v16 = vmul.f32 %v70_v15, %v261_v0  ;;  %s189_s26 = sld [smem:[#allocation2 + $0xf]] }
  0x14   :  { %v72_v17 = vstv %s183_s21  ;;  %s271_s27 = sld [smem:[#allocation2 + $0x16]]  ;;  %v36_v26 = vstv %s265_s22 }
  0x15   :  { %207 = vtanh.f32 %v46_v13  ;;  %v60_v18 = vmul.f32 0.5, %v59_v14  ;;  %v73_v19 = vadd.f32 %v72_v17, %v71_v16  ;;  %v84_v20 = vstv %s185_s1  ;;  %s191_s28 = sld [smem:[#allocation2 + $0x6]] }
  0x16   :  { %v85_v22 = vmul.f32 %v84_v20, %v261_v0  ;;  %v86_v23 = vstv %s186_s23  ;;  %s274_s29 = sld [smem:[#allocation2 + $0x10]] }
  0x17   :  { %209 = vtanh.f32 %v60_v18  ;;  %s276_s30 = sld [smem:[#allocation2 + $0x17]]  ;;  %v74_v25 = vmul.f32 0.5, %v73_v19  ;;  %v50_v36 = vstv %s268_s24 }
  0x18   :  { %v87_v27 = vadd.f32 %v86_v23, %v85_v22  ;;  %v98_v28 = vstv %s188_s25  ;;  %s279_s3 = sld [smem:[#allocation2 + $0x7]] }
  0x19   :  { %v206_v21 = vpop.eup %205  ;;  %211 = vtanh.f32 %v74_v25  ;;  %v99_v31 = vmul.f32 %v98_v28, %v261_v0  ;;  %v100_v32 = vstv %s189_s26  ;;  %s282_s4 = sld [smem:[#allocation2 + $0x11]] }
  0x1a   :  { %v34_v24 = vmul.f32 0.5, %v206_v21  ;;  %s284_s5 = sld [smem:[#allocation2 + $0x18]]  ;;  %v88_v34 = vmul.f32 0.5, %v87_v27  ;;  %v64_v46 = vstv %s271_s27 }
  0x1b   :  { %v208_v29 = vpop.eup %207  ;;  %v101_v37 = vadd.f32 %v100_v32, %v99_v31  ;;  %v112_v38 = vstv %s191_s28  ;;  %s287_s6 = sld [smem:[#allocation2 + $0x8]] }
  0x1c   :  { %v35_v30 = vadd.f32 0.5, %v34_v24  ;;  %v48_v33 = vmul.f32 0.5, %v208_v29  ;;  %213 = vtanh.f32 %v88_v34  ;;  %v113_v41 = vmul.f32 %v112_v38, %v261_v0  ;;  %s291_s7 = sld [smem:[#allocation2 + $0x12]] }
  0x1d   :  { %v210_v39 = vpop.eup %209  ;;  %v114_v42 = vstv %s274_s29  ;;  %s293_s8 = sld [smem:[#allocation2 + $0x19]]  ;;  %v102_v44 = vmul.f32 0.5, %v101_v37  ;;  %v78_v57 = vstv %s276_s30 }
  0x1e   :  { %v37_v35 = vmul.f32 %v36_v26, %v35_v30  ;;  %v49_v40 = vadd.f32 0.5, %v48_v33  ;;  %v62_v43 = vmul.f32 0.5, %v210_v39  ;;  %v115_v47 = vadd.f32 %v114_v42, %v113_v41  ;;  %s297_s9 = sld [smem:[#allocation2 + $0x9]] }
  0x1f   :  { %v126_v48 = vstv %s279_s3  ;;  %v212_v49 = vpop.eup %211  ;;  %215 = vtanh.f32 %v102_v44  ;;  %v128_v52 = vstv %s282_s4  ;;  %s301_s10 = sld [smem:[#allocation2 + $0x13]] }
  0x20   :  { %v51_v45 = vmul.f32 %v50_v36, %v49_v40  ;;  %v63_v50 = vadd.f32 0.5, %v62_v43  ;;  %v127_v51 = vmul.f32 %v126_v48, %v261_v0  ;;  %v76_v54 = vmul.f32 0.5, %v212_v49  ;;  %s305_s11 = sld [smem:[#allocation2 + $0x1a]] }
  0x21   :  { %v116_v55 = vmul.f32 0.5, %v115_v47  ;;  %v140_v59 = vstv %s287_s6  ;;  %v92_v5 = vstv %s284_s5  ;;  %s311_s12 = sld [smem:[#allocation2 + $0x1b]] }
  0x22   :  { %v52_v53 = vadd.f32 %v51_v45, %v37_v35  ;;  %v65_v56 = vmul.f32 %v64_v46, %v63_v50  ;;  %v129_v58 = vadd.f32 %v128_v52, %v127_v51  ;;  %v214_v60 = vpop.eup %213  ;;  %v77_v61 = vadd.f32 0.5, %v76_v54  ;;  %s199_s13 = sld [smem:[#allocation2 + $0x1c]] }
  0x23   :  { %217 = vtanh.f32 %v116_v55  ;;  %v141_v62 = vmul.f32 %v140_v59, %v261_v0  ;;  %v142_v63 = vstv %s291_s7  ;;  %v90_v2 = vmul.f32 0.5, %v214_v60  ;;  %s202_s14 = sld [smem:[#allocation2 + $0x1d]] }
  0x24   :  { %v66_v1 = vadd.f32 %v65_v56, %v52_v53  ;;  %v130_v3 = vmul.f32 0.5, %v129_v58  ;;  %v79_v4 = vmul.f32 %v78_v57, %v77_v61  ;;  %v154_v7 = vstv %s297_s9  ;;  %s203_s15 = sld [smem:[#allocation2 + $0x1e]] }
  0x25   :  { %v143_v6 = vadd.f32 %v142_v63, %v141_v62  ;;  %v216_v8 = vpop.eup %215  ;;  %v91_v9 = vadd.f32 0.5, %v90_v2  ;;  %v155_v10 = vmul.f32 %v154_v7, %v261_v0  ;;  %v156_v11 = vstv %s301_s10 }
  0x26   :  { %219 = vtanh.f32 %v130_v3  ;;  %v80_v12 = vadd.f32 %v79_v4, %v66_v1  ;;  %v104_v13 = vmul.f32 0.5, %v216_v8  ;;  %v106_v16 = vstv %s293_s8 }
  0x27   :  { %v144_v14 = vmul.f32 0.5, %v143_v6  ;;  %v93_v15 = vmul.f32 %v92_v5, %v91_v9  ;;  %v157_v17 = vadd.f32 %v156_v11, %v155_v10  ;;  %v120_v24 = vstv %s305_s11 }
  0x28   :  { %v105_v19 = vadd.f32 0.5, %v104_v13  ;;  %v134_v29 = vstv %s311_s12  ;;  %v148_v35 = vstv %s199_s13 }
  0x29   :  { %v218_v18 = vpop.eup %217  ;;  %221 = vtanh.f32 %v144_v14  ;;  %v94_v20 = vadd.f32 %v93_v15, %v80_v12  ;;  %v158_v22 = vmul.f32 0.5, %v157_v17  ;;  %v162_v41 = vstv %s202_s14 }
  0x2a   :  { %v118_v21 = vmul.f32 0.5, %v218_v18  ;;  %v107_v23 = vmul.f32 %v106_v16, %v105_v19  ;;  %v166_v45 = vstv %s203_s15 }
  0x2b   :  { %223 = vtanh.f32 %v158_v22 }
  0x2c   :  { %v220_v25 = vpop.eup %219  ;;  %v119_v0 = vadd.f32 0.5, %v118_v21  ;;  %v108_v26 = vadd.f32 %v107_v23, %v94_v20 }
  0x2d   :  { %v132_v27 = vmul.f32 0.5, %v220_v25 }
  0x2e   :  { %v121_v28 = vmul.f32 %v120_v24, %v119_v0 }
  0x2f   :  { %v222_v30 = vpop.eup %221  ;;  %v133_v31 = vadd.f32 0.5, %v132_v27 }
  0x30   :  { %v122_v32 = vadd.f32 %v121_v28, %v108_v26  ;;  %v146_v33 = vmul.f32 0.5, %v222_v30 }
  0x31   :  { %v135_v34 = vmul.f32 %v134_v29, %v133_v31  ;;  %v224_v36 = vpop.eup %223 }
  0x32   :  { %v147_v37 = vadd.f32 0.5, %v146_v33  ;;  %v160_v39 = vmul.f32 0.5, %v224_v36 }
  0x33   :  { %v136_v38 = vadd.f32 %v135_v34, %v122_v32 }
  0x34   :  { %v149_v40 = vmul.f32 %v148_v35, %v147_v37  ;;  %v161_v42 = vadd.f32 0.5, %v160_v39 }
  0x36   :  { %v150_v43 = vadd.f32 %v149_v40, %v136_v38  ;;  %v163_v44 = vmul.f32 %v162_v41, %v161_v42 }
  0x38   :  { %v164_v46 = vadd.f32 %v163_v44, %v150_v43 }
  0x3a   :  { %v167_v47 = vadd.f32 %v166_v45, %v164_v46 }
  0x3c   :  { %168 = vst [vmem:[%s323_s2] sm:$0xff] %v167_v47 }
  0x3d   :  { %173 = vsyncpa [#allocation3], 1 }

</bundles_post_ra>
